<compile_context>
chip_gen: v7x
topology: tpu7x:2x2x1
jax: 0.10.0
libtpu: 0.0.40
codegen_flags: <defaults>
</compile_context>

<pallas_src>
import functools

import jax
import jax.numpy as jnp
from jax import lax
from jax.experimental import pallas as pl
from jax.experimental.pallas import tpu as pltpu


def _pool_rows_kernel(x_ref, max_ref, mean_ref, max_acc, sum_acc,
                      *, tl, true_l, needs_mask):
    """Running max / sum over the L (last, 'arbitrary') grid axis.

    x_ref    : (TR, TL)  input block (rows = batch*channel)
    max_ref  : (TR, 1)   max over L
    mean_ref : (TR, 1)   mean over L
    """
    k = pl.program_id(1)

    @pl.when(k == 0)
    def _init():
        max_acc[...] = jnp.full(max_acc.shape, -jnp.inf, dtype=max_acc.dtype)
        sum_acc[...] = jnp.zeros(sum_acc.shape, dtype=sum_acc.dtype)

    x = x_ref[...].astype(jnp.float32)                       # (TR, TL)

    if needs_mask:
        # Mask out-of-range L columns of the (padded) remainder tile.
        col = k * tl + lax.broadcasted_iota(jnp.int32, x.shape, 1)
        valid = col < true_l
        x_max = jnp.where(valid, x, -jnp.inf)
        x_sum = jnp.where(valid, x, 0.0)
    else:
        x_max = x
        x_sum = x

    max_acc[...] = jnp.maximum(max_acc[...],
                               jnp.max(x_max, axis=-1, keepdims=True))
    sum_acc[...] = sum_acc[...] + jnp.sum(x_sum, axis=-1, keepdims=True)

    @pl.when(k == pl.num_programs(1) - 1)
    def _finalize():
        max_ref[...] = max_acc[...].astype(max_ref.dtype)
        # mean = running_sum * (1 / true_L); single multiply on the tiny output.
        mean_ref[...] = (sum_acc[...] * (1.0 / true_l)).astype(mean_ref.dtype)


def _choose_tiles(r, l, itemsize, target_bytes):
    """Pick (TR, TL) so one input block is a multi-MiB, layout-legal DMA."""
    if r * l * itemsize <= target_bytes:
        return r, l                                    # whole tensor in one block
    # Prefer full L (single reduction step, contiguous rows in HBM).
    rows_budget = target_bytes // max(l * itemsize, 1)
    if rows_budget >= 8:
        tr = min(r, (rows_budget // 8) * 8)            # multiple of 8 (or full r)
        return tr, l
    # Rows are very long: tile L as well.
    tr = 8 if r >= 8 else r
    tl_budget = max(1, target_bytes // (tr * itemsize))
    if l <= tl_budget:
        tl = l
    else:
        tl = max(128, (tl_budget // 128) * 128)        # multiple of 128
    return tr, tl


def adaptive_concat_pool1d(cnn: jax.Array, *, target_block_bytes=8 << 20) -> jax.Array:
    """cnn: (N, C, L) -> (N, 2*C, 1) = cat([max_L, mean_L], axis=1)."""
    n, c, l = cnn.shape
    r = n * c
    itemsize = jnp.dtype(cnn.dtype).itemsize

    # Free (row-major) view: rows = batch*channel, cols = L.
    x2 = cnn.reshape(r, l)

    tr, tl = _choose_tiles(r, l, itemsize, target_block_bytes)
    needs_mask = (l % tl) != 0
    grid = (pl.cdiv(r, tr), pl.cdiv(l, tl))

    in_block_bytes = tr * tl * itemsize
    # Double-buffered input + tiny outputs/scratch + headroom; safe on all gens.
    vmem_limit = int(min(max(2 * in_block_bytes + (2 << 20), 16 << 20), 64 << 20))

    kernel = functools.partial(
        _pool_rows_kernel, tl=tl, true_l=l, needs_mask=needs_mask)

    mx, mean = pl.pallas_call(
        kernel,
        out_shape=(jax.ShapeDtypeStruct((r, 1), cnn.dtype),
                   jax.ShapeDtypeStruct((r, 1), cnn.dtype)),
        grid_spec=pltpu.PrefetchScalarGridSpec(
            num_scalar_prefetch=0,
            grid=grid,
            in_specs=[pl.BlockSpec((tr, tl), lambda b, k: (b, k))],
            out_specs=(pl.BlockSpec((tr, 1), lambda b, k: (b, 0)),
                       pl.BlockSpec((tr, 1), lambda b, k: (b, 0))),
            scratch_shapes=[pltpu.VMEM((tr, 1), jnp.float32),   # running max
                            pltpu.VMEM((tr, 1), jnp.float32)],  # running sum
        ),
        compiler_params=pltpu.CompilerParams(
            dimension_semantics=("parallel", "arbitrary"),
            vmem_limit_bytes=vmem_limit),
        cost_estimate=pl.CostEstimate(
            flops=2 * r * l,
            transcendentals=0,
            bytes_accessed=r * l * itemsize + 2 * r * itemsize),
    )(x2)

    # Tiny reassembly on (N, C) data: reshape + concat along channel dim.
    return jnp.concatenate([mx.reshape(n, c, 1), mean.reshape(n, c, 1)], axis=1)


def cat_adaptive_concat_pool1d(x):
    """Mirror of catAdaptiveConcatPool1d.forward: x = (cnn, gru)."""
    cnn, gru = x
    pool = adaptive_concat_pool1d(cnn)
    return [pool, gru]   # gru is a pure pass-through (no compute)


if __name__ == "__main__":
    key = jax.random.PRNGKey(0)
    k_cnn, k_gru, k_big = jax.random.split(key, 3)

    # Small shapes consistent with the module: cnn (N, C, L), gru arbitrary.
    N, C, L = 2, 4, 16
    cnn = jax.random.normal(k_cnn, (N, C, L), dtype=jnp.float32)
    gru = jax.random.normal(k_gru, (N, 8, 32), dtype=jnp.float32)

    pool, gru_out = cat_adaptive_concat_pool1d((cnn, gru))
    jax.block_until_ready(pool)
    jax.block_until_ready(gru_out)

    ref = jnp.concatenate(
        [jnp.max(cnn, axis=-1, keepdims=True),
         jnp.mean(cnn, axis=-1, keepdims=True)], axis=1)
    assert pool.shape == (N, 2 * C, 1)
    assert jnp.allclose(pool, ref, atol=1e-6, rtol=1e-6)
    assert jnp.array_equal(gru_out, gru)

    # Exercise the row-blocked + L-blocked + masked-remainder path on
    # still-small data by shrinking the per-block byte target.
    N2, C2, L2 = 16, 8, 200
    cnn2 = jax.random.normal(k_big, (N2, C2, L2), dtype=jnp.float32)
    pool2 = adaptive_concat_pool1d(cnn2, target_block_bytes=4096)
    jax.block_until_ready(pool2)
    ref2 = jnp.concatenate(
        [jnp.max(cnn2, axis=-1, keepdims=True),
         jnp.mean(cnn2, axis=-1, keepdims=True)], axis=1)
    assert pool2.shape == (N2, 2 * C2, 1)
    assert jnp.allclose(pool2, ref2, atol=1e-5, rtol=1e-5)

    print("KERNEL_OK")
</pallas_src>

<mosaic_0001>
module attributes {stable_mosaic.version = 11 : i64} {
  func.func @_pool_rows_kernel(%arg0: i32, %arg1: i32, %arg2: memref<8x16xf32, #tpu.memory_space<vmem>>, %arg3: memref<8x1xf32, #tpu.memory_space<vmem>>, %arg4: memref<8x1xf32, #tpu.memory_space<vmem>>, %arg5: memref<8x1xf32, #tpu.memory_space<vmem>>, %arg6: memref<8x1xf32, #tpu.memory_space<vmem>>) attributes {dimension_semantics = [#tpu.dimension_semantics<parallel>, #tpu.dimension_semantics<arbitrary>], iteration_bounds = array<i64: 1, 1>, scalar_prefetch = 0 : i64, scratch_operands = 2 : i64, tpu.core_type = #tpu.core_type<tc>, window_params = [{transform_indices = @transform_0, window_bounds = array<i64: 8, 16>}, {transform_indices = @transform_1, window_bounds = array<i64: 8, 1>}, {transform_indices = @transform_2, window_bounds = array<i64: 8, 1>}]} {
    %c0_i32 = arith.constant 0 : i32
    %0 = arith.cmpi eq, %arg1, %c0_i32 : i32
    %1 = arith.extui %0 : i1 to i32
    %c0_i32_0 = arith.constant 0 : i32
    %2 = arith.cmpi ne, %1, %c0_i32_0 : i32
    scf.if %2 {
      %cst_13 = arith.constant 0xFF800000 : f32
      %17 = vector.broadcast %cst_13 : f32 to vector<8x1xf32>
      %c0_14 = arith.constant 0 : index
      %c0_15 = arith.constant 0 : index
      %18 = vector.load %arg5[%c0_14, %c0_15] : memref<8x1xf32, #tpu.memory_space<vmem>>, vector<8x1xf32>
      tpu.vector_store %arg5[%c0_14, %c0_15], %17 {strides = array<i32>} : memref<8x1xf32, #tpu.memory_space<vmem>>, vector<8x1xf32>,
      %cst_16 = arith.constant 0.000000e+00 : f32
      %19 = vector.broadcast %cst_16 : f32 to vector<8x1xf32>
      %c0_17 = arith.constant 0 : index
      %c0_18 = arith.constant 0 : index
      %20 = vector.load %arg6[%c0_17, %c0_18] : memref<8x1xf32, #tpu.memory_space<vmem>>, vector<8x1xf32>
      tpu.vector_store %arg6[%c0_17, %c0_18], %19 {strides = array<i32>} : memref<8x1xf32, #tpu.memory_space<vmem>>, vector<8x1xf32>,
    } else {
    }
    %c0 = arith.constant 0 : index
    %c0_1 = arith.constant 0 : index
    %3 = vector.load %arg2[%c0, %c0_1] : memref<8x16xf32, #tpu.memory_space<vmem>>, vector<8x16xf32>
    %c0_2 = arith.constant 0 : index
    %c0_3 = arith.constant 0 : index
    %4 = vector.load %arg5[%c0_2, %c0_3] : memref<8x1xf32, #tpu.memory_space<vmem>>, vector<8x1xf32>
    %cst = arith.constant dense<0xFF800000> : vector<8xf32>
    %5 = vector.multi_reduction <maximumf>, %3, %cst [1] : vector<8x16xf32> to vector<8xf32>
    %6 = vector.shape_cast %5 : vector<8xf32> to vector<8x1xf32>
    %7 = arith.maximumf %4, %6 : vector<8x1xf32>
    %c0_4 = arith.constant 0 : index
    %c0_5 = arith.constant 0 : index
    %8 = vector.load %arg5[%c0_4, %c0_5] : memref<8x1xf32, #tpu.memory_space<vmem>>, vector<8x1xf32>
    tpu.vector_store %arg5[%c0_4, %c0_5], %7 {strides = array<i32>} : memref<8x1xf32, #tpu.memory_space<vmem>>, vector<8x1xf32>,
    %c0_6 = arith.constant 0 : index
    %c0_7 = arith.constant 0 : index
    %9 = vector.load %arg6[%c0_6, %c0_7] : memref<8x1xf32, #tpu.memory_space<vmem>>, vector<8x1xf32>
    %cst_8 = arith.constant dense<0.000000e+00> : vector<8xf32>
    %10 = vector.multi_reduction <add>, %3, %cst_8 [1] : vector<8x16xf32> to vector<8xf32>
    %11 = vector.shape_cast %10 : vector<8xf32> to vector<8x1xf32>
    %12 = arith.addf %9, %11 : vector<8x1xf32>
    %c0_9 = arith.constant 0 : index
    %c0_10 = arith.constant 0 : index
    %13 = vector.load %arg6[%c0_9, %c0_10] : memref<8x1xf32, #tpu.memory_space<vmem>>, vector<8x1xf32>
    tpu.vector_store %arg6[%c0_9, %c0_10], %12 {strides = array<i32>} : memref<8x1xf32, #tpu.memory_space<vmem>>, vector<8x1xf32>,
    %c0_i32_11 = arith.constant 0 : i32
    %14 = arith.cmpi eq, %arg1, %c0_i32_11 : i32
    %15 = arith.extui %14 : i1 to i32
    %c0_i32_12 = arith.constant 0 : i32
    %16 = arith.cmpi ne, %15, %c0_i32_12 : i32
    scf.if %16 {
      %c0_13 = arith.constant 0 : index
      %c0_14 = arith.constant 0 : index
      %17 = vector.load %arg5[%c0_13, %c0_14] : memref<8x1xf32, #tpu.memory_space<vmem>>, vector<8x1xf32>
      %c0_15 = arith.constant 0 : index
      %c0_16 = arith.constant 0 : index
      %18 = vector.load %arg3[%c0_15, %c0_16] : memref<8x1xf32, #tpu.memory_space<vmem>>, vector<8x1xf32>
      tpu.vector_store %arg3[%c0_15, %c0_16], %17 {strides = array<i32>} : memref<8x1xf32, #tpu.memory_space<vmem>>, vector<8x1xf32>,
      %c0_17 = arith.constant 0 : index
      %c0_18 = arith.constant 0 : index
      %19 = vector.load %arg6[%c0_17, %c0_18] : memref<8x1xf32, #tpu.memory_space<vmem>>, vector<8x1xf32>
      %cst_19 = arith.constant 6.250000e-02 : f32
      %20 = vector.broadcast %cst_19 : f32 to vector<8x1xf32>
      %21 = arith.mulf %19, %20 : vector<8x1xf32>
      %c0_20 = arith.constant 0 : index
      %c0_21 = arith.constant 0 : index
      %22 = vector.load %arg4[%c0_20, %c0_21] : memref<8x1xf32, #tpu.memory_space<vmem>>, vector<8x1xf32>
      tpu.vector_store %arg4[%c0_20, %c0_21], %21 {strides = array<i32>} : memref<8x1xf32, #tpu.memory_space<vmem>>, vector<8x1xf32>,
    } else {
    }
    return
  }
  func.func @transform_0(%arg0: i32, %arg1: i32) -> (i32, i32) {
    %c0_i32 = arith.constant 0 : i32
    return %arg0, %arg1 : i32, i32
  }
  func.func @transform_1(%arg0: i32, %arg1: i32) -> (i32, i32) {
    %c0_i32 = arith.constant 0 : i32
    %c0_i32_0 = arith.constant 0 : i32
    return %arg0, %c0_i32 : i32, i32
  }
  func.func @transform_2(%arg0: i32, %arg1: i32) -> (i32, i32) {
    %c0_i32 = arith.constant 0 : i32
    %c0_i32_0 = arith.constant 0 : i32
    return %arg0, %c0_i32 : i32, i32
  }
}

</mosaic_0001>

<bundles_post_ra>
// kernel: tpu_custom_call.1
= control target key start
LH: loop header
LB: loop body
LE: loop exit
PB: predicated region body
PF: predicated region fallthrough
CT: control target
= control target key end

     0   :  { %8 = vsyncpa [#allocation5], 0  ;;  %s88_s9 = smov [#allocation4]   ;;  %s130_s0 = inlined_call_operand.hbm [shape: f32[8,16], index: 0, kind: input, shape index: {}]   ;;  %s131_s1 = inlined_call_operand.vmem [shape: f32[8,1], index: 1, kind: output, shape index: {0}]   ;;  %s132_s2 = inlined_call_operand.vmem [shape: f32[8,1], index: 2, kind: output, shape index: {1}]  }
   0x1   :  { %s15_s10 = sshll.u32 %s88_s9, 4  ;;  %s64_s13 = scalar_lea.hbm %s130_s0, 128  ;;  %s16_s10 = int_to_ptr.vmem [resolvable:$true] %s15_s10 }
   0x2   :  { %p65_p0 = scmp.ne.s32.totalorder %s130_s0, %s64_s13  ;;  %p68_p1 = scmp.lt.u32.totalorder %s64_s13, %s130_s0 }
   0x4   :  { %p70_p2 = pnand %p68_p1, %p65_p0 }
   0x6   :  { %73 = shalt.err (!%p70_p2)
}
   0x7   :  { %s74_s18 = scalar_lea.vmem %s16_s10, 128  ;;  %p79_p4 = scmp.lt.s32.totalorder %s16_s10, %s16_s10 }
   0x8   :  { %p75_p3 = scmp.ne.s32.totalorder %s16_s10, %s74_s18  ;;  %p80_p5 = scmp.lt.s32.totalorder %s74_s18, %s74_s18 }
   0xa   :  { %p81_p6 = por %p80_p5, %p79_p4 }
   0xc   :  { %p82_p7 = pnand %p81_p6, %p75_p3 }
   0xe   :  { %85 = shalt.err (!%p82_p7)
}
   0xf   :  { %18 = dma.hbm_to_vmem [thread:$0]  %s130_s0, 128, %s16_s10, [#allocation5]  }
  0x10   :  { %86 = dma.done.wait [#allocation5], 128  }
  0x11   :  { %87 = vsyncadd [#allocation5], 4294967168  ;;  %vm26_vm0 = vcmask 7168   ;;  %v89_v0 = vmov 0.0   ;;  %vm31_vm1 = vcmask 130048   ;;  %v29_v1 = vld [vmem:[#allocation4] sm:$0xff] }
  0x12   :  { %28 = vst.msk [vmem:[#allocation3] sm:$0xff] %vm26_vm0, %v89_v0  ;;  %v39_v2 = vsel %vm31_vm1, %v29_v1, 0.0  ;;  %v32_v3 = vsel %vm31_vm1, %v29_v1, -inf  ;;  %v90_v4 = vmov -inf  }
  0x13   :  { %40 = vadd.xlane.f32.xlu0 %v39_v2  ;;  %27 = vst.msk [vmem:[#allocation2] sm:$0xff] %vm26_vm0, %v90_v4 }
  0x17   :  { %33 = vmax.xlane.f32.xlu0 %v32_v3 }
  0x19   :  { %v38_v5 = vld [vmem:[#allocation3] sm:$0xff] }
  0x1a   :  { %v30_v8 = vld [vmem:[#allocation2] sm:$0xff] }
  0xa0   :  { %v41_v6 = vpop.xlane.xlu0 %40 }
  0xa1   :  { %v42_v7 = vadd.f32 %v41_v6, %v38_v5 }
  0xa3   :  { %43 = vst.msk [vmem:[#allocation3] sm:$0xff] %vm26_vm0, %v42_v7 }
  0xa4   :  { %v34_v9 = vpop.xlane.xlu0 %33 }
  0xa5   :  { %v35_v10 = vmax.f32 %v30_v8, %v34_v9 }
  0xa7   :  { %37 = vst.msk [vmem:[#allocation2] sm:$0xff] %vm26_vm0, %v35_v10 }
  0xaa   :  { %v49_v11 = vld [vmem:[#allocation3] sm:$0xff] }
  0xab   :  { %v50_v12 = vmul.f32 0.0625, %v49_v11 }
  0xad   :  { %51 = vst.msk [vmem:[%s132_s2] sm:$0xff] %vm26_vm0, %v50_v12 }
  0xae   :  { %v47_v13 = vld [vmem:[#allocation2] sm:$0xff] }
  0xaf   :  { %48 = vst.msk [vmem:[%s131_s1] sm:$0xff] %vm26_vm0, %v47_v13 }
  0xb0   :  { %60 = vsyncpa [#allocation5], 1 }

</bundles_post_ra>
